<compile_context>
chip_gen: v7x
topology: tpu7x:2x2x1
jax: 0.10.0
libtpu: 0.0.40
codegen_flags: <defaults>
</compile_context>

<pallas_src>
import math

import jax
import jax.numpy as jnp
from jax.experimental import pallas as pl
from jax.experimental.pallas import tpu as pltpu

M_ANGLE = 4
# k = floor(m*acos(c)/pi) = sum_j [c <= cos(j*pi/m)].  The j=4 threshold
# (cos(pi) = -1) is dropped: phi_theta is continuous there, so the output value
# at c == -1 is unchanged.
_COS_PI_4 = math.cos(math.pi / 4.0)
_COS_3PI_4 = math.cos(3.0 * math.pi / 4.0)


def angle_linear_kernel(x_ref, ww_ref, xlen_ref, inv_xlen_ref, cos_ref, phi_ref):
    # MXU matmul, f32 accumulation.  1/wlen is already folded into ww columns.
    s = jnp.dot(x_ref[...], ww_ref[...], preferred_element_type=jnp.float32)  # (TM,TN)

    xlen = xlen_ref[...]          # (TM, 1) f32, hoisted row norms
    inv_xlen = inv_xlen_ref[...]  # (TM, 1) f32

    cos_theta = jnp.clip(s * inv_xlen, -1.0, 1.0)

    # cos(4*theta) = (8 c^2 - 8) c^2 + 1   (one fewer multiply than 8c^4-8c^2+1).
    csq = cos_theta * cos_theta
    cos_m_theta = (8.0 * csq - 8.0) * csq + 1.0

    # k and (-1)^k without acos / floor / mod.
    b0 = cos_theta <= _COS_PI_4
    b1 = cos_theta <= 0.0
    b2 = cos_theta <= _COS_3PI_4
    parity = jnp.logical_xor(jnp.logical_xor(b0, b1), b2)             # k odd?
    k = b0.astype(jnp.float32) + b1.astype(jnp.float32) + b2.astype(jnp.float32)
    phi_theta = jnp.where(parity, -cos_m_theta, cos_m_theta) - (k + k)

    # cos output: clip(s*inv_xlen, -1, 1) * xlen == clip(s, -xlen, xlen)  (xlen>=0).
    cos_ref[...] = jnp.clip(s, -xlen, xlen).astype(cos_ref.dtype)
    phi_ref[...] = (phi_theta * xlen).astype(phi_ref.dtype)


def _round_up(v, m):
    return ((v + m - 1) // m) * m


def angle_linear(x, weight, *, matmul_dtype=jnp.bfloat16, out_dtype=jnp.float32,
                 single_block_max_bytes=12 * 1024 * 1024):
    """x: (B, in_features) f32; weight: (in_features, out_features) f32.

    Returns (cos_theta * xlen, phi_theta * xlen), both (B, out_features) out_dtype.
    """
    B, D = x.shape
    D2, O = weight.shape
    assert D == D2

    # ---- hoisted (done once, not per tile) -----------------------------------
    # w.renorm(2, 1, 1e-5).mul(1e5): columns with norm > 1e-5 rescaled to unit norm.
    col_norm = jnp.sqrt(jnp.sum(weight * weight, axis=0, keepdims=True))      # (1, O)
    scale = jnp.where(col_norm > 1e-5, 1e-5 / (col_norm + 1e-7), 1.0)
    ww = weight * (scale * 1e5)
    # Fold 1/wlen into the weight columns (wlen ~ 1); guard all-zero columns.
    wlen = jnp.sqrt(jnp.sum(ww * ww, axis=0, keepdims=True))
    ww = ww / jnp.where(wlen > 0.0, wlen, 1.0)
    ww_mm = ww.astype(matmul_dtype)

    # Row norms hoisted: computed once instead of once per O tile.
    xsq = jnp.sum(x * x, axis=1, keepdims=True)                               # (B, 1)
    xlen = jnp.sqrt(xsq)
    inv_xlen = 1.0 / xlen          # inf for all-zero rows -> NaN (matches PyTorch 0/0)
    x_mm = x.astype(matmul_dtype)  # bf16 activation stream

    mm_bytes = jnp.dtype(matmul_dtype).itemsize
    out_bytes = jnp.dtype(out_dtype).itemsize

    out_pair = lambda b, o: (jax.ShapeDtypeStruct((b, o), out_dtype),
                             jax.ShapeDtypeStruct((b, o), out_dtype))

    # ---- single-block fast path (no grid-step overhead) -----------------------
    single_vmem = (B * D * mm_bytes + D * O * mm_bytes + 2 * B * 4
                   + 2 * B * O * out_bytes)
    if single_vmem <= single_block_max_bytes:
        return pl.pallas_call(
            angle_linear_kernel,
            out_shape=out_pair(B, O),
        )(x_mm, ww_mm, xlen, inv_xlen)

    # ---- tiled path ------------------------------------------------------------
    TM = 256 if (B % 256 == 0 or B >= 2048) else 128
    if O <= 1024:
        TN = _round_up(O, 128)
    else:
        TN = 512
        for cand in (1024, 512, 256):
            if O % cand == 0:
                TN = cand
                break

    def vmem_est(tm, tn):
        # double-buffered inputs / outputs per grid step
        return 2 * (tm * D * mm_bytes + D * tn * mm_bytes + 2 * tm * 4
                    + 2 * tm * tn * out_bytes)

    while TN > 128 and vmem_est(TM, TN) > 24 * 1024 * 1024:
        TN = max(128, _round_up(TN // 2, 128))
    while TM > 128 and vmem_est(TM, TN) > 24 * 1024 * 1024:
        TM //= 2

    Bp, Op = _round_up(B, TM), _round_up(O, TN)
    if Bp != B:
        pad = Bp - B
        x_mm = jnp.pad(x_mm, ((0, pad), (0, 0)))
        xlen = jnp.pad(xlen, ((0, pad), (0, 0)))
        inv_xlen = jnp.pad(inv_xlen, ((0, pad), (0, 0)))
    if Op != O:
        ww_mm = jnp.pad(ww_mm, ((0, 0), (0, Op - O)))

    # Grid order: the operand belonging to the inner axis is re-fetched once per
    # outer step; pick the order with fewer total HBM read bytes.
    read_o_outer = D * Op * mm_bytes + (Op // TN) * Bp * D * mm_bytes
    read_b_outer = Bp * D * mm_bytes + (Bp // TM) * D * Op * mm_bytes
    if read_o_outer <= read_b_outer:
        grid = (Op // TN, Bp // TM)            # O tiles outer, batch tiles inner
        x_spec = pl.BlockSpec((TM, D), lambda j, i: (i, 0))
        w_spec = pl.BlockSpec((D, TN), lambda j, i: (0, j))
        n_spec = pl.BlockSpec((TM, 1), lambda j, i: (i, 0))
        o_spec = pl.BlockSpec((TM, TN), lambda j, i: (i, j))
        semantics = ("parallel", "arbitrary")  # O axis parallel -> v7x TC split on O
    else:
        grid = (Bp // TM, Op // TN)            # batch outer, O inner
        x_spec = pl.BlockSpec((TM, D), lambda i, j: (i, 0))
        w_spec = pl.BlockSpec((D, TN), lambda i, j: (0, j))
        n_spec = pl.BlockSpec((TM, 1), lambda i, j: (i, 0))
        o_spec = pl.BlockSpec((TM, TN), lambda i, j: (i, j))
        semantics = ("arbitrary", "parallel")

    cos_p, phi_p = pl.pallas_call(
        angle_linear_kernel,
        out_shape=out_pair(Bp, Op),
        grid_spec=pltpu.PrefetchScalarGridSpec(
            num_scalar_prefetch=0,
            grid=grid,
            in_specs=[x_spec, w_spec, n_spec, n_spec],
            out_specs=(o_spec, o_spec),
        ),
        compiler_params=pltpu.CompilerParams(
            dimension_semantics=semantics,
            vmem_limit_bytes=32 * 1024 * 1024,
        ),
    )(x_mm, ww_mm, xlen, inv_xlen)

    if Bp != B or Op != O:
        cos_p, phi_p = cos_p[:B, :O], phi_p[:B, :O]
    return cos_p, phi_p


def angle_linear_ref(x, weight, m=M_ANGLE):
    """Pure-JAX reference mirroring the PyTorch forward (phiflag=True, m=4)."""
    col_norm = jnp.sqrt(jnp.sum(weight * weight, axis=0, keepdims=True))
    ww = jnp.where(col_norm > 1e-5, weight * (1e-5 / (col_norm + 1e-7)), weight) * 1e5
    xlen = jnp.sqrt(jnp.sum(x * x, axis=1, keepdims=True))
    wlen = jnp.sqrt(jnp.sum(ww * ww, axis=0, keepdims=True))
    cos_theta = jnp.clip(
        jnp.dot(x, ww, precision=jax.lax.Precision.HIGHEST) / xlen / wlen, -1.0, 1.0)
    cos_m_theta = 8.0 * cos_theta ** 4 - 8.0 * cos_theta ** 2 + 1.0
    theta = jnp.arccos(cos_theta)
    k = jnp.floor(m * theta / math.pi)
    sign = jnp.where(jnp.mod(k, 2.0) == 0.0, 1.0, -1.0)
    phi_theta = sign * cos_m_theta - 2.0 * k
    return cos_theta * xlen, phi_theta * xlen


if __name__ == "__main__":
    B, IN_FEATURES, OUT_FEATURES = 16, 64, 384

    key = jax.random.PRNGKey(0)
    kx, kw = jax.random.split(key)

    # __init__: weight.uniform_(-1, 1).renorm_(2, 1, 1e-5).mul_(1e5)
    w_raw = jax.random.uniform(
        kw, (IN_FEATURES, OUT_FEATURES), jnp.float32, minval=-1.0, maxval=1.0)
    cn = jnp.sqrt(jnp.sum(w_raw * w_raw, axis=0, keepdims=True))
    weight = jnp.where(cn > 1e-5, w_raw * (1e-5 / (cn + 1e-7)), w_raw) * 1e5

    x = jax.random.normal(kx, (B, IN_FEATURES), jnp.float32)

    cos_ref_v, phi_ref_v = angle_linear_ref(x, weight)

    # Single-block fast path (default for this small shape).
    cos1, phi1 = angle_linear(x, weight)
    jax.block_until_ready((cos1, phi1))
    # Force the tiled (padded, gridded) path too, to exercise the BlockSpec code.
    cos2, phi2 = angle_linear(x, weight, single_block_max_bytes=0)
    jax.block_until_ready((cos2, phi2))

    for cos_k, phi_k in ((cos1, phi1), (cos2, phi2)):
        assert cos_k.shape == (B, OUT_FEATURES)
        assert phi_k.shape == (B, OUT_FEATURES)
        assert bool(jnp.all(jnp.isfinite(cos_k)))
        assert bool(jnp.all(jnp.isfinite(phi_k)))
        # Loose tolerances: bf16 matmul perturbs cos_theta by O(1e-2 * xlen) worst case.
        assert float(jnp.max(jnp.abs(cos_k - cos_ref_v))) < 0.2
        assert float(jnp.max(jnp.abs(phi_k - phi_ref_v))) < 1.5

    print("KERNEL_OK")
</pallas_src>

<mosaic_0001>
module attributes {stable_mosaic.version = 11 : i64} {
  func.func @angle_linear_kernel(%arg0: memref<16x64xbf16, #tpu.memory_space<vmem>>, %arg1: memref<64x384xbf16, #tpu.memory_space<vmem>>, %arg2: memref<16x1xf32, #tpu.memory_space<vmem>>, %arg3: memref<16x1xf32, #tpu.memory_space<vmem>>, %arg4: memref<16x384xf32, #tpu.memory_space<vmem>>, %arg5: memref<16x384xf32, #tpu.memory_space<vmem>>) attributes {dimension_semantics = [], scalar_prefetch = 0 : i64, scratch_operands = 0 : i64, tpu.core_type = #tpu.core_type<tc>} {
    %c0 = arith.constant 0 : index
    %c0_0 = arith.constant 0 : index
    %0 = vector.load %arg0[%c0, %c0_0] : memref<16x64xbf16, #tpu.memory_space<vmem>>, vector<16x64xbf16>
    %c0_1 = arith.constant 0 : index
    %c0_2 = arith.constant 0 : index
    %1 = vector.load %arg1[%c0_1, %c0_2] : memref<64x384xbf16, #tpu.memory_space<vmem>>, vector<64x384xbf16>
    %cst = arith.constant dense<0.000000e+00> : vector<16x384xf32>
    %2 = tpu.matmul %0, %1, %cst {dimension_numbers = #tpu.dot_dimension_numbers<[1], [0], [0], [1], [0, 0, 1, 1], [], []>} : vector<16x64xbf16>, vector<64x384xbf16>, vector<16x384xf32> -> vector<16x384xf32>
    %c0_3 = arith.constant 0 : index
    %c0_4 = arith.constant 0 : index
    %3 = vector.load %arg2[%c0_3, %c0_4] : memref<16x1xf32, #tpu.memory_space<vmem>>, vector<16x1xf32>
    %c0_5 = arith.constant 0 : index
    %c0_6 = arith.constant 0 : index
    %4 = vector.load %arg3[%c0_5, %c0_6] : memref<16x1xf32, #tpu.memory_space<vmem>>, vector<16x1xf32>
    %5 = vector.broadcast %4 : vector<16x1xf32> to vector<16x384xf32>
    %6 = arith.mulf %2, %5 : vector<16x384xf32>
    %cst_7 = arith.constant -1.000000e+00 : f32
    %cst_8 = arith.constant 1.000000e+00 : f32
    %7 = vector.broadcast %cst_7 : f32 to vector<16x384xf32>
    %8 = arith.maximumf %7, %6 : vector<16x384xf32>
    %9 = vector.broadcast %cst_8 : f32 to vector<16x384xf32>
    %10 = arith.minimumf %9, %8 : vector<16x384xf32>
    %11 = arith.mulf %10, %10 : vector<16x384xf32>
    %cst_9 = arith.constant 8.000000e+00 : f32
    %12 = vector.broadcast %cst_9 : f32 to vector<16x384xf32>
    %13 = arith.mulf %12, %11 : vector<16x384xf32>
    %cst_10 = arith.constant 8.000000e+00 : f32
    %14 = vector.broadcast %cst_10 : f32 to vector<16x384xf32>
    %15 = arith.subf %13, %14 : vector<16x384xf32>
    %16 = arith.mulf %15, %11 : vector<16x384xf32>
    %cst_11 = arith.constant 1.000000e+00 : f32
    %17 = vector.broadcast %cst_11 : f32 to vector<16x384xf32>
    %18 = arith.addf %16, %17 : vector<16x384xf32>
    %cst_12 = arith.constant 0.707106769 : f32
    %19 = vector.broadcast %cst_12 : f32 to vector<16x384xf32>
    %20 = arith.cmpf ole, %10, %19 : vector<16x384xf32>
    %cst_13 = arith.constant 0.000000e+00 : f32
    %21 = vector.broadcast %cst_13 : f32 to vector<16x384xf32>
    %22 = arith.cmpf ole, %10, %21 : vector<16x384xf32>
    %cst_14 = arith.constant -0.707106769 : f32
    %23 = vector.broadcast %cst_14 : f32 to vector<16x384xf32>
    %24 = arith.cmpf ole, %10, %23 : vector<16x384xf32>
    %25 = arith.xori %20, %22 : vector<16x384xi1>
    %26 = arith.xori %25, %24 : vector<16x384xi1>
    %27 = arith.extui %20 : vector<16x384xi1> to vector<16x384xi32>
    %28 = arith.sitofp %27 : vector<16x384xi32> to vector<16x384xf32>
    %29 = arith.extui %22 : vector<16x384xi1> to vector<16x384xi32>
    %30 = arith.sitofp %29 : vector<16x384xi32> to vector<16x384xf32>
    %31 = arith.addf %28, %30 : vector<16x384xf32>
    %32 = arith.extui %24 : vector<16x384xi1> to vector<16x384xi32>
    %33 = arith.sitofp %32 : vector<16x384xi32> to vector<16x384xf32>
    %34 = arith.addf %31, %33 : vector<16x384xf32>
    %cst_15 = arith.constant 0.000000e+00 : f32
    %35 = vector.broadcast %cst_15 : f32 to vector<16x384xf32>
    %36 = arith.subf %35, %18 : vector<16x384xf32>
    %37 = arith.select %26, %36, %18 : vector<16x384xi1>, vector<16x384xf32>
    %38 = arith.addf %34, %34 : vector<16x384xf32>
    %39 = arith.subf %37, %38 : vector<16x384xf32>
    %cst_16 = arith.constant 0.000000e+00 : f32
    %40 = vector.broadcast %cst_16 : f32 to vector<16x1xf32>
    %41 = arith.subf %40, %3 : vector<16x1xf32>
    %42 = vector.broadcast %41 : vector<16x1xf32> to vector<16x384xf32>
    %43 = arith.maximumf %42, %2 : vector<16x384xf32>
    %44 = vector.broadcast %3 : vector<16x1xf32> to vector<16x384xf32>
    %45 = arith.minimumf %44, %43 : vector<16x384xf32>
    %c0_17 = arith.constant 0 : index
    %c0_18 = arith.constant 0 : index
    %46 = vector.load %arg4[%c0_17, %c0_18] : memref<16x384xf32, #tpu.memory_space<vmem>>, vector<16x384xf32>
    tpu.vector_store %arg4[%c0_17, %c0_18], %45 {strides = array<i32>} : memref<16x384xf32, #tpu.memory_space<vmem>>, vector<16x384xf32>,
    %47 = vector.broadcast %3 : vector<16x1xf32> to vector<16x384xf32>
    %48 = arith.mulf %39, %47 : vector<16x384xf32>
    %c0_19 = arith.constant 0 : index
    %c0_20 = arith.constant 0 : index
    %49 = vector.load %arg5[%c0_19, %c0_20] : memref<16x384xf32, #tpu.memory_space<vmem>>, vector<16x384xf32>
    tpu.vector_store %arg5[%c0_19, %c0_20], %48 {strides = array<i32>} : memref<16x384xf32, #tpu.memory_space<vmem>>, vector<16x384xf32>,
    return
  }
}

</mosaic_0001>

<bundles_post_ra>
// kernel: tpu_custom_call.1
= control target key start
LH: loop header
LB: loop body
LE: loop exit
PB: predicated region body
PF: predicated region fallthrough
CT: control target
= control target key end

     0   :  { %11 = vsyncpa [#allocation3], 0  ;;  %s857_s0 = inlined_call_operand.vmem [shape: bf16[16,64], index: 0, kind: input, shape index: {}]   ;;  %s858_s1 = inlined_call_operand.hbm [shape: bf16[64,384], index: 1, kind: input, shape index: {}]   ;;  %s859_s2 = inlined_call_operand.vmem [shape: f32[16,1], index: 2, kind: input, shape index: {}]   ;;  %s860_s3 = inlined_call_operand.vmem [shape: f32[16,1], index: 3, kind: input, shape index: {}]   ;;  %s861_s4 = inlined_call_operand.hbm [shape: f32[16,384], index: 4, kind: output, shape index: {0}]   ;;  %s862_s5 = inlined_call_operand.hbm [shape: f32[16,384], index: 5, kind: output, shape index: {1}]  }
   0x1   :  { %12 = vsyncpa [#allocation4], 0 }
   0x2   :  { %13 = vsyncpa [#allocation7], 0  ;;  %s623_s18 = smov [#allocation2]   ;;  %s551_s22 = scalar_lea.hbm %s858_s1, 1536 }
   0x3   :  { %s21_s19 = sshll.u32 %s623_s18, 4  ;;  %p552_p0 = scmp.ne.s32.totalorder %s858_s1, %s551_s22  ;;  %s22_s19 = int_to_ptr.vmem [resolvable:$true] %s21_s19 }
   0x4   :  { %p555_p1 = scmp.lt.u32.totalorder %s551_s22, %s858_s1 }
   0x6   :  { %p557_p2 = pnand %p555_p1, %p552_p0 }
   0x8   :  { %560 = shalt.err (!%p557_p2)
}
   0x9   :  { %s561_s27 = scalar_lea.vmem %s22_s19, 1536  ;;  %p566_p4 = scmp.lt.s32.totalorder %s22_s19, %s22_s19 }
   0xa   :  { %p562_p3 = scmp.ne.s32.totalorder %s22_s19, %s561_s27  ;;  %p567_p5 = scmp.lt.s32.totalorder %s561_s27, %s561_s27 }
   0xc   :  { %p568_p6 = por %p567_p5, %p566_p4 }
   0xe   :  { %p569_p7 = pnand %p568_p6, %p562_p3 }
  0x10   :  { %572 = shalt.err (!%p569_p7)
}
  0x11   :  { %s624_s28 = smov 192   ;;  %s625_s29 = smov 12  }
  0x12   :  { %27 = dma.hbm_to_vmem [thread:$0]  %s858_s1, 1536, %s22_s19, [#allocation3], %s624_s28, %s624_s28, %s625_s29  }
  0x13   :  { %617 = dma.done.wait [#allocation3], 1536  }
  0x14   :  { %618 = vsyncadd [#allocation3], 4294965760  ;;  %v626_v0 = vmov 0.0   ;;  %vm627_vm0 = vmmov 0   ;;  %v628_v1 = vmov 0   ;;  %v213_v12 = vld [vmem:[%s860_s3] sm:$0xff] }
  0x15   :  { %510 = vmatprep.subr.bf16.mxu1 %v626_v0  ;;  %518 = vmatprep.mubr.msk.bf16.mxu1 %vm627_vm0, %v626_v0  ;;  %v534_v2 = vld [vmem:[#allocation2 + $0x4] ss:$12 sps:$4 sm:$0xff]   ;;  %v536_v3 = vld [vmem:[#allocation2 + $0x8] ss:$12 sps:$4 sm:$0xff]   ;;  %v537_v4 = vld [vmem:[#allocation2] ss:$12 sps:$4 sm:$0xff]  }
  0x16   :  { %159 = vmatprep.mubr.bf16.mxu0 %v628_v1  ;;  %532 = vset.pattern.permute.xlu0 %v628_v1  ;;  %v538_v5 = vld [vmem:[#allocation2 + $0x1c] ss:$12 sps:$4 sm:$0xff]   ;;  %v540_v6 = vld [vmem:[#allocation2 + $0x20] ss:$12 sps:$4 sm:$0xff]   ;;  %v541_v7 = vld [vmem:[#allocation2 + $0x18] ss:$12 sps:$4 sm:$0xff]  }
  0x17   :  { %533 = vset.pattern.permute.xlu1 %v628_v1  ;;  %127 = vmatprep.subr.bf16.mxu0 %v534_v2  ;;  %v542_v8 = vld [vmem:[#allocation2 + $0x34] ss:$12 sps:$4 sm:$0xff]   ;;  %v544_v9 = vld [vmem:[#allocation2 + $0x38] ss:$12 sps:$4 sm:$0xff]   ;;  %v545_v10 = vld [vmem:[#allocation2 + $0x30] ss:$12 sps:$4 sm:$0xff]  }
  0x18   :  { %511 = vmatpush3.bf16.msra.mxu1 %v536_v3  ;;  %128 = vmatpush1.bf16.msra.mxu0 %v537_v4  ;;  %v546_v11 = vld [vmem:[#allocation2 + $0x4c] ss:$12 sps:$4 sm:$0xff]   ;;  %v548_v13 = vld [vmem:[#allocation2 + $0x50] ss:$12 sps:$4 sm:$0xff]   ;;  %v211_v14 = vld [vmem:[%s859_s2] sm:$0xff]  ;;  %vm123_vm1 = vcmask 523264  }
  0x19   :  { %512 = vmatprep.subr.bf16.mxu1 %v626_v0  ;;  %129 = vmatprep.subr.bf16.mxu0 %v538_v5  ;;  %v212_v15 = vld [vmem:[%s859_s2 + $0x8] sm:$0xff]  ;;  %v375_v18 = vsub.f32 0.0, %v211_v14  ;;  %v550_v19 = vld [vmem:[%s857_s0] sm:$0xff]   ;;  %s629_s0 = smov [#allocation5]  }
  0x1a   :  { %217 = vperm.xlu0 %532, %v213_v12   ;;  %v549_v16 = vld [vmem:[#allocation2 + $0x48] ss:$12 sps:$4 sm:$0xff]   ;;  %v376_v20 = vsub.f32 0.0, %v212_v15  ;;  %s432_s2 = sshll.u32 %s629_s0, 4  ;;  %s798_s2 = int_to_ptr.vmem [resolvable:$true] %s432_s2 }
  0x1b   :  { %v214_v17 = vld [vmem:[%s860_s3 + $0x8] sm:$0xff]  ;;  %379 = vperm.xlu1 %533, %v375_v18   ;;  %s573_s3 = scalar_lea.vmem %s798_s2, 768  ;;  %p578_p9 = scmp.lt.s32.totalorder %s798_s2, %s798_s2 }
  0x1c   :  { %513 = vmatpush3.bf16.msra.mxu1 %v540_v6  ;;  %130 = vmatpush1.bf16.msra.mxu0 %v541_v7  ;;  %p574_p8 = scmp.ne.s32.totalorder %s798_s2, %s573_s3  ;;  %p579_p10 = scmp.lt.s32.totalorder %s573_s3, %s573_s3 }
  0x1d   :  { %514 = vmatprep.subr.bf16.mxu1 %v626_v0  ;;  %131 = vmatprep.subr.bf16.mxu0 %v542_v8 }
  0x1e   :  { %222 = vperm.xlu0 %532, %v214_v17   ;;  %p580_p11 = por %p579_p10, %p578_p9 }
  0x1f   :  { %384 = vperm.xlu1 %533, %v376_v20  }
  0x20   :  { %515 = vmatpush3.bf16.msra.mxu1 %v544_v9  ;;  %132 = vmatpush1.bf16.msra.mxu0 %v545_v10  ;;  %p581_p12 = pnand %p580_p11, %p574_p8 }
  0x21   :  { %516 = vmatprep.subr.bf16.mxu1 %v626_v0  ;;  %133 = vmatprep.subr.bf16.mxu0 %v546_v11 }
  0x22   :  { %395 = vperm.xlu0 %532, %v211_v14  }
  0x23   :  { %400 = vperm.xlu1 %533, %v212_v15  }
  0x24   :  { %517 = vmatpush3.bf16.msra.mxu1 %v548_v13  ;;  %134 = vmatpush1.bf16.msra.mxu0 %v549_v16 }
  0x27   :  { %519 = vmatmul.mubr.msk.bf16.vlgmr.msra.gmra.mrb[0].mxu1 %vm123_vm1, %v550_v19  ;;  %473 = vmatmul.mubr.msk.bf16.vlgmr.msra.gmra.mrb[0].mxu0 %vm123_vm1, %v550_v19 }
  0x99   :  { %v218_v21 = vpop.permute.xlu0 %217 }
  0x9a   :  { %v380_v23 = vpop.permute.xlu1 %379 }
  0x9d   :  { %v695_v22 = vpop.permute.xlu0 %222 }
  0x9e   :  { %v715_v51 = vpop.permute.xlu1 %384 }
  0xa1   :  { %v697_v24 = vpop.permute.xlu0 %395 }
  0xfa   :  { %v204_v25 = vpop.f32.mrb[0].mxu1  ;;  %v161_v28 = vpop.f32.mrb[0].mxu0 }
  0xfb   :  { %v227_v26 = vmul.f32 %v218_v21, %v204_v25  ;;  %v389_v27 = vmax.f32 %v380_v23, %v204_v25  ;;  %v520_v29 = vpop.f32.mrb[1].mxu1  ;;  %v225_v30 = vmul.f32 %v218_v21, %v161_v28  ;;  %v387_v31 = vmax.f32 %v380_v23, %v161_v28  ;;  %v163_v32 = vpop.f32.mrb[1].mxu0 }
  0xfc   :  { %v699_v33 = vpop.f32.mrb[2].mxu1  ;;  %v226_v36 = vmul.f32 %v218_v21, %v163_v32  ;;  %v702_v37 = vpop.f32.mrb[2].mxu0  ;;  %v388_v41 = vmax.f32 %v380_v23, %v163_v32 }
  0xfd   :  { %v477_v34 = vclamps-f32 %v227_v26, 1.0  ;;  %v405_v35 = vmin.f32 %v697_v24, %v389_v27  ;;  %v521_v38 = vpop.f32.mrb[3].mxu1  ;;  %v475_v39 = vclamps-f32 %v225_v30, 1.0  ;;  %v403_v40 = vmin.f32 %v697_v24, %v387_v31  ;;  %v707_v43 = vpop.f32.mrb[3].mxu0 }
  0xfe   :  { %v230_v42 = vmul.f32 %v695_v22, %v699_v33  ;;  %v392_v58 = vmax.f32 %v715_v51, %v699_v33  ;;  %v476_v61 = vclamps-f32 %v226_v36, 1.0  ;;  %v404_v62 = vmin.f32 %v697_v24, %v388_v41 }
  0xff   :  { %v245_v44 = vmul.f32 %v477_v34, %v477_v34  ;;  %vm275_vm2 = vcmp.le.f32.partialorder %v477_v34, 0.70710677  ;;  %vm281_vm3 = vcmp.le.f32.partialorder %v477_v34, 0.0  ;;  %vm287_vm4 = vcmp.le.f32.partialorder %v477_v34, -0.70710677  ;;  %411 = vst [vmem:[#allocation5 + $0x10] sm:$0xff] %v405_v35 }
 0x100   :  { %v489_v45 = vsel %vm275_vm2, 1.0, %v626_v0  ;;  %v495_v46 = vsel %vm281_vm3, 1.0, %v626_v0  ;;  %v501_v47 = vsel %vm287_vm4, 1.0, %v626_v0  ;;  %v243_v48 = vmul.f32 %v475_v39, %v475_v39  ;;  %409 = vst [vmem:[#allocation5] sm:$0xff] %v403_v40  ;;  %410 = vst [vmem:[#allocation5 + $0x8] sm:$0xff] %v404_v62 }
 0x101   :  { %v251_v49 = vmul.f32 8.0, %v245_v44  ;;  %v329_v50 = vadd.f32 %v495_v46, %v489_v45  ;;  %vm273_vm5 = vcmp.le.f32.partialorder %v475_v39, 0.70710677  ;;  %vm279_vm6 = vcmp.le.f32.partialorder %v475_v39, 0.0  ;;  %vm293_vm10 = vmxor %vm275_vm2, %vm281_vm3  ;;  %v769_v45 = vpop.permute.xlu1 %400 }
 0x102   :  { %v249_v52 = vmul.f32 8.0, %v243_v48  ;;  %vm285_vm7 = vcmp.le.f32.partialorder %v475_v39, -0.70710677  ;;  %v487_v53 = vsel %vm273_vm5, 1.0, %v626_v0  ;;  %v493_v54 = vsel %vm279_vm6, 1.0, %v626_v0  ;;  %vm291_vm12 = vmxor %vm273_vm5, %vm279_vm6 }
 0x103   :  { %v483_v55 = vadd.f32 -8.0, %v251_v49  ;;  %v347_v56 = vadd.f32 %v501_v47, %v329_v50  ;;  %v327_v57 = vadd.f32 %v493_v54, %v487_v53  ;;  %v499_v60 = vsel %vm285_vm7, 1.0, %v626_v0  ;;  %vm299_vm14 = vmxor %vm293_vm10, %vm287_vm4 }
 0x104   :  { %v481_v59 = vadd.f32 -8.0, %v249_v52  ;;  %v726_v3 = vclamps-f32 %v230_v42, 1.0  ;;  %v244_v5 = vmul.f32 %v476_v61, %v476_v61  ;;  %vm274_vm8 = vcmp.le.f32.partialorder %v476_v61, 0.70710677  ;;  %vm297_vm0 = vmxor %vm291_vm12, %vm285_vm7 }
 0x105   :  { %v263_v63 = vmul.f32 %v483_v55, %v245_v44  ;;  %v365_v1 = vadd.f32 %v347_v56, %v347_v56  ;;  %v345_v2 = vadd.f32 %v499_v60, %v327_v57  ;;  %vm280_vm9 = vcmp.le.f32.partialorder %v476_v61, 0.0 }
 0x106   :  { %v261_v4 = vmul.f32 %v481_v59, %v243_v48  ;;  %vm286_vm11 = vcmp.le.f32.partialorder %v476_v61, -0.70710677  ;;  %v488_v7 = vsel %vm274_vm8, 1.0, %v626_v0  ;;  %v228_v8 = vmul.f32 %v695_v22, %v702_v37  ;;  %vm292_vm2 = vmxor %vm274_vm8, %vm280_vm9 }
 0x107   :  { %v269_v6 = vadd.f32 1.0, %v263_v63  ;;  %v363_v10 = vadd.f32 %v345_v2, %v345_v2  ;;  %v250_v11 = vmul.f32 8.0, %v244_v5  ;;  %v494_v12 = vsel %vm280_vm9, 1.0, %v626_v0  ;;  %vm298_vm3 = vmxor %vm292_vm2, %vm286_vm11 }
 0x108   :  { %v267_v9 = vadd.f32 1.0, %v261_v4  ;;  %v328_v14 = vadd.f32 %v494_v12, %v488_v7  ;;  %v248_v15 = vmul.f32 %v726_v3, %v726_v3  ;;  %vm278_vm13 = vcmp.le.f32.partialorder %v726_v3, 0.70710677 }
 0x109   :  { %v353_v13 = vsub.f32 0.0, %v269_v6  ;;  %v482_v17 = vadd.f32 -8.0, %v250_v11  ;;  %v500_v18 = vsel %vm286_vm11, 1.0, %v626_v0  ;;  %vm284_vm15 = vcmp.le.f32.partialorder %v726_v3, 0.0 }
 0x10a   :  { %v351_v16 = vsub.f32 0.0, %v267_v9  ;;  %v254_v20 = vmul.f32 8.0, %v248_v15  ;;  %vm290_vm1 = vcmp.le.f32.partialorder %v726_v3, -0.70710677  ;;  %v492_v21 = vsel %vm278_vm13, 1.0, %v626_v0  ;;  %vm296_vm6 = vmxor %vm278_vm13, %vm284_vm15 }
 0x10b   :  { %v359_v19 = vsel %vm299_vm14, %v353_v13, %v269_v6  ;;  %v262_v26 = vmul.f32 %v482_v17, %v244_v5  ;;  %v498_v27 = vsel %vm284_vm15, 1.0, %v626_v0  ;;  %v346_v29 = vadd.f32 %v500_v18, %v328_v14  ;;  %vm302_vm8 = vmxor %vm296_vm6, %vm290_vm1 }
 0x10c   :  { %v371_v23 = vsub.f32 %v359_v19, %v365_v1  ;;  %v357_v25 = vsel %vm297_vm0, %v351_v16, %v267_v9  ;;  %v486_v30 = vadd.f32 -8.0, %v254_v20  ;;  %v332_v31 = vadd.f32 %v498_v27, %v492_v21 }
 0x10d   :  { %v369_v28 = vsub.f32 %v357_v25, %v363_v10  ;;  %v268_v34 = vadd.f32 1.0, %v262_v26  ;;  %v504_v35 = vsel %vm290_vm1, 1.0, %v626_v0  ;;  %v759_v36 = vclamps-f32 %v228_v8, 1.0 }
 0x10e   :  { %v417_v32 = vmul.f32 %v697_v24, %v371_v23  ;;  %v266_v39 = vmul.f32 %v486_v30, %v248_v15  ;;  %v350_v40 = vadd.f32 %v504_v35, %v332_v31  ;;  %v390_v41 = vmax.f32 %v715_v51, %v702_v37 }
 0x10f   :  { %v415_v38 = vmul.f32 %v697_v24, %v369_v28  ;;  %v352_v42 = vsub.f32 0.0, %v268_v34  ;;  %v246_v44 = vmul.f32 %v759_v36, %v759_v36  ;;  %vm276_vm4 = vcmp.le.f32.partialorder %v759_v36, 0.70710677 }
 0x110   :  { %423 = vst [vmem:[#allocation6 + $0x10] sm:$0xff] %v417_v32  ;;  %vm282_vm5 = vcmp.le.f32.partialorder %v759_v36, 0.0  ;;  %v364_v46 = vadd.f32 %v346_v29, %v346_v29  ;;  %v272_v47 = vadd.f32 1.0, %v266_v39  ;;  %v490_v37 = vsel %vm276_vm4, 1.0, %v626_v0 }
 0x111   :  { %421 = vst [vmem:[#allocation6] sm:$0xff] %v415_v38  ;;  %v496_v48 = vsel %vm282_vm5, 1.0, %v626_v0  ;;  %v358_v49 = vsel %vm298_vm3, %v352_v42, %v268_v34  ;;  %v252_v50 = vmul.f32 8.0, %v246_v44  ;;  %vm288_vm7 = vcmp.le.f32.partialorder %v759_v36, -0.70710677  ;;  %vm804_vm9 = vmxor %vm276_vm4, %vm282_vm5 }
 0x112   :  { %v370_v52 = vsub.f32 %v358_v49, %v364_v46  ;;  %v356_v53 = vsub.f32 0.0, %v272_v47  ;;  %v330_v54 = vadd.f32 %v496_v48, %v490_v37  ;;  %v406_v55 = vmin.f32 %v769_v45, %v390_v41 }
 0x113   :  { %v484_v56 = vadd.f32 -8.0, %v252_v50  ;;  %v368_v57 = vadd.f32 %v350_v40, %v350_v40  ;;  %v408_v59 = vmin.f32 %v769_v45, %v392_v58  ;;  %v229_v60 = vmul.f32 %v695_v22, %v707_v43 }
 0x114   :  { %v416_v61 = vmul.f32 %v697_v24, %v370_v52  ;;  %v362_v62 = vsel %vm302_vm8, %v356_v53, %v272_v47  ;;  %412 = vst [vmem:[#allocation5 + $0x18] sm:$0xff] %v406_v55  ;;  %v391_v63 = vmax.f32 %v715_v51, %v707_v43  ;;  %v502_v2 = vsel %vm288_vm7, 1.0, %v626_v0 }
 0x115   :  { %v264_v1 = vmul.f32 %v484_v56, %v246_v44  ;;  %v374_v33 = vsub.f32 %v362_v62, %v368_v57  ;;  %414 = vst [vmem:[#allocation5 + $0x28] sm:$0xff] %v408_v59  ;;  %v479_v58 = vclamps-f32 %v229_v60, 1.0  ;;  %v348_v3 = vadd.f32 %v502_v2, %v330_v54 }
 0x116   :  { %422 = vst [vmem:[#allocation6 + $0x8] sm:$0xff] %v416_v61  ;;  %v407_v22 = vmin.f32 %v769_v45, %v391_v63 }
 0x117   :  { %v270_v24 = vadd.f32 1.0, %v264_v1  ;;  %v420_v51 = vmul.f32 %v769_v45, %v374_v33  ;;  %v247_v4 = vmul.f32 %v479_v58, %v479_v58  ;;  %vm277_vm10 = vcmp.le.f32.partialorder %v479_v58, 0.70710677 }
 0x118   :  { %vm283_vm11 = vcmp.le.f32.partialorder %v479_v58, 0.0  ;;  %v491_v5 = vsel %vm277_vm10, 1.0, %v626_v0  ;;  %413 = vst [vmem:[#allocation5 + $0x20] sm:$0xff] %v407_v22 }
 0x119   :  { %v354_v6 = vsub.f32 0.0, %v270_v24  ;;  %426 = vst [vmem:[#allocation6 + $0x28] sm:$0xff] %v420_v51  ;;  %v253_v7 = vmul.f32 8.0, %v247_v4  ;;  %v497_v8 = vsel %vm283_vm11, 1.0, %v626_v0 }
 0x11a   :  { %584 = shalt.err (!%p581_p12)
}
 0x11b   :  { %s585_s18 = scalar_lea.hbm %s861_s4, 768 }
 0x11c   :  { %p586_p13 = scmp.ne.s32.totalorder %s861_s4, %s585_s18  ;;  %p589_p0 = scmp.lt.u32.totalorder %s585_s18, %s861_s4 }
 0x11e   :  { %p591_p1 = pnand %p589_p0, %p586_p13 }
 0x120   :  { %594 = shalt.err (!%p591_p1)
}
 0x121   :  { %s630_s23 = smov 384   ;;  %s631_s24 = smov 24   ;;  %vm300_vm12 = vmxor %vm804_vm9, %vm288_vm7  ;;  %v366_v9 = vadd.f32 %v348_v3, %v348_v3  ;;  %vm289_vm13 = vcmp.le.f32.partialorder %v479_v58, -0.70710677  ;;  %v331_v10 = vadd.f32 %v497_v8, %v491_v5  ;;  %v485_v12 = vadd.f32 -8.0, %v253_v7 }
 0x122   :  { %438 = dma.vmem_to_hbm [thread:$0]  %s798_s2, 768, %s861_s4, [#allocation4], %s630_s23, %s630_s23, %s631_s24   ;;  %v360_v11 = vsel %vm300_vm12, %v354_v6, %v270_v24  ;;  %v503_v15 = vsel %vm289_vm13, 1.0, %v626_v0  ;;  %vm295_vm14 = vmxor %vm277_vm10, %vm283_vm11 }
 0x123   :  { %v372_v13 = vsub.f32 %v360_v11, %v366_v9  ;;  %v265_v14 = vmul.f32 %v485_v12, %v247_v4  ;;  %v349_v17 = vadd.f32 %v503_v15, %v331_v10  ;;  %vm301_vm15 = vmxor %vm295_vm14, %vm289_vm13  ;;  %s632_s4 = smov [#allocation6]  }
 0x124   :  { %s444_s27 = sshll.u32 %s632_s4, 4  ;;  %s445_s27 = int_to_ptr.vmem [resolvable:$true] %s444_s27 }
 0x125   :  { %v418_v16 = vmul.f32 %v769_v45, %v372_v13  ;;  %v271_v18 = vadd.f32 1.0, %v265_v14  ;;  %v367_v20 = vadd.f32 %v349_v17, %v349_v17  ;;  %s595_s28 = scalar_lea.vmem %s445_s27, 768  ;;  %p600_p3 = scmp.lt.s32.totalorder %s445_s27, %s445_s27 }
 0x126   :  { %p596_p2 = scmp.ne.s32.totalorder %s445_s27, %s595_s28  ;;  %p601_p4 = scmp.lt.s32.totalorder %s595_s28, %s595_s28 }
 0x127   :  { %424 = vst [vmem:[#allocation6 + $0x18] sm:$0xff] %v418_v16  ;;  %v355_v19 = vsub.f32 0.0, %v271_v18 }
 0x128   :  { %p602_p5 = por %p601_p4, %p600_p3 }
 0x129   :  { %v361_v21 = vsel %vm301_vm15, %v355_v19, %v271_v18 }
 0x12a   :  { %v373_v23 = vsub.f32 %v361_v21, %v367_v20  ;;  %p603_p6 = pnand %p602_p5, %p596_p2 }
 0x12c   :  { %v419_v25 = vmul.f32 %v769_v45, %v373_v23 }
 0x12e   :  { %425 = vst [vmem:[#allocation6 + $0x20] sm:$0xff] %v419_v25 }
 0x12f   :  { %606 = shalt.err (!%p603_p6)
}
 0x130   :  { %s607_s6 = scalar_lea.hbm %s862_s5, 768 }
 0x131   :  { %p608_p7 = scmp.ne.s32.totalorder %s862_s5, %s607_s6  ;;  %p611_p8 = scmp.lt.u32.totalorder %s607_s6, %s862_s5 }
 0x133   :  { %p613_p9 = pnand %p611_p8, %p608_p7 }
 0x135   :  { %616 = shalt.err (!%p613_p9)
}
 0x136   :  { %450 = dma.vmem_to_hbm [thread:$0]  %s445_s27, 768, %s862_s5, [#allocation7], %s630_s23, %s630_s23, %s631_s24  }
 0x137   :  { %619 = dma.done.wait [#allocation4], 768  }
 0x138   :  { %620 = vsyncadd [#allocation4], 4294966528 }
 0x139   :  { %621 = dma.done.wait [#allocation7], 768  }
 0x13a   :  { %622 = vsyncadd [#allocation7], 4294966528 }
 0x13b   :  { %457 = vsyncpa [#allocation3], 1 }
 0x13c   :  { %458 = vsyncpa [#allocation4], 1 }
 0x13d   :  { %459 = vsyncpa [#allocation7], 1 }

</bundles_post_ra>
